<compile_context>
chip_gen: v7x
topology: tpu7x:2x2x1
jax: 0.10.0
libtpu: 0.0.40
codegen_flags: <defaults>
</compile_context>

<pallas_src>
import functools

import jax
import jax.numpy as jnp
from jax.experimental import pallas as pl
from jax.experimental.pallas import tpu as pltpu


def _round_up(x, m):
    return ((x + m - 1) // m) * m


def _vmem_budget():
    """(tile-footprint budget, vmem_limit_bytes) derived from the chip generation."""
    cap = None
    try:
        cap = getattr(pltpu.get_tpu_info(), "vmem_capacity_bytes", None)
    except Exception:
        cap = None
    if not cap:
        cap = 64 * 1024 * 1024        # v7x per-TC floor; safe on every generation
    budget = int(cap) * 65 // 100     # double-buffered tiles
    limit = int(cap) * 3 // 4         # leave headroom for Mosaic internal scratch
    return budget, limit


def _choose_tiles(M, K, N_pad, mm_bytes, out_bytes, sub, budget):
    """Pick tm (multiple of `sub`, prefers tm | M) and tn (128-mult dividing N_pad)."""
    # tn: the whole (padded) N if the resident weight tile fits, else step down.
    # 512/256 preferred before 384 (v6e/v7x MXU is 2x256 wide).
    tn_cands = [N_pad] + [t for t in (512, 256, 384, 128)
                          if t < N_pad and N_pad % t == 0]
    tn = tn_cands[-1]
    for cand in tn_cands:
        if 2 * K * cand * mm_bytes <= budget // 2:
            tn = cand
            break

    def foot(tm):
        # double-buffered X + W + bias tiles plus the output tile
        return 2 * (tm * K * mm_bytes + K * tn * mm_bytes + tn * 4
                    + tm * tn * out_bytes)

    # tm: prefer a tile that divides M (no M padding, no post-kernel slice copy),
    # rounded to the dtype sublane pack.
    tm_cands = []
    if M <= 1024:
        tm_cands.append(M if M % sub == 0 else _round_up(M, sub))
    tm_cands += [t for t in (1024, 512, 256, 128) if M % t == 0]
    tm_cands += [512, 256, 128, 64, 2 * sub, sub]       # padded-M fallbacks
    for tm in tm_cands:
        if tm % sub == 0 and foot(tm) <= budget:
            return tm, tn
    return sub, tn


def _patch_proj_kernel(x_ref, w_ref, b_ref, o_ref):
    # x_ref: (tm, K) mm_dtype; w_ref: (K, tn) mm_dtype; b_ref: (1, tn) f32
    acc = jnp.dot(x_ref[...], w_ref[...], preferred_element_type=jnp.float32)
    o_ref[...] = (acc + b_ref[...]).astype(o_ref.dtype)


@functools.partial(jax.jit, static_argnames=("patch_size", "matmul_dtype"))
def patch_embed_forward(latent, weight, bias, *, patch_size, matmul_dtype=None):
    """latent: (B, C, H, W) NCHW.  weight: (embed_dim, C, p, p).  bias: (embed_dim,)."""
    B, C, H, W = latent.shape
    p = patch_size
    embed_dim = weight.shape[0]
    nh, nw = H // p, W // p

    out_dtype = latent.dtype
    if matmul_dtype is not None:
        mm_dtype = jnp.dtype(matmul_dtype)
    elif jnp.dtype(out_dtype) == jnp.float32:
        # Default MXU fast path: bf16 operands, f32 accumulation + f32 bias.
        # Strict-precision users pass matmul_dtype=jnp.float32.
        mm_dtype = jnp.dtype(jnp.bfloat16)
    else:
        mm_dtype = jnp.dtype(out_dtype)

    # --- glue: patchify (matches conv's (c, kh, kw) reduction order); the cast
    # is fused by XLA into the same relayout pass, and K is left unpadded so no
    # extra padded copy of x is materialized in HBM.
    # TODO(synk): fold the patchify itself into the kernel (a (1, C, p, W)
    # latent BlockSpec + in-VMEM rearrangement) to drop this HBM round trip.
    x = latent.reshape(B, C, nh, p, nw, p)
    x = jnp.transpose(x, (0, 2, 4, 1, 3, 5))                     # (B, nh, nw, C, p, p)
    x = x.reshape(B * nh * nw, C * p * p).astype(mm_dtype)       # (M, K)
    w = weight.reshape(embed_dim, C * p * p).T.astype(mm_dtype)  # (K, N)

    M, K = x.shape
    N = embed_dim

    # K unpadded (full-extent block dims are exempt from the (8,128) rule);
    # only N padded to a lane multiple and M to the chosen tile.
    N_pad = _round_up(N, 128)
    sub = 16 if mm_dtype == jnp.bfloat16 else 8
    mm_bytes = mm_dtype.itemsize
    out_bytes = jnp.dtype(out_dtype).itemsize
    budget, vmem_limit = _vmem_budget()
    tm, tn = _choose_tiles(M, K, N_pad, mm_bytes, out_bytes, sub, budget)
    M_pad = _round_up(M, tm)

    if M_pad != M:
        x = jnp.pad(x, ((0, M_pad - M), (0, 0)))
    if N_pad != N:
        w = jnp.pad(w, ((0, 0), (0, N_pad - N)))
    b = bias.astype(jnp.float32)
    if N_pad != N:
        b = jnp.pad(b, (0, N_pad - N))
    b = b.reshape(1, N_pad)

    gm = M_pad // tm
    gn = N_pad // tn

    cost = pl.CostEstimate(
        flops=2 * M_pad * N_pad * K,
        transcendentals=0,
        bytes_accessed=(M_pad * K * mm_bytes            # X streamed once
                        + gm * K * N_pad * mm_bytes     # W per M step (once if resident)
                        + N_pad * 4
                        + M_pad * N_pad * out_bytes),
    )

    out = pl.pallas_call(
        _patch_proj_kernel,
        out_shape=jax.ShapeDtypeStruct((M_pad, N_pad), out_dtype),
        grid_spec=pltpu.PrefetchScalarGridSpec(
            num_scalar_prefetch=0,
            # M outer ("parallel" -> balances v7x's two TCs), N inner: the big
            # X tile is fetched once per M step and stays resident across the
            # whole N sweep; only the small weight tile re-streams (and with
            # tn == N_pad it is fetched exactly once).
            grid=(gm, gn),
            in_specs=[
                pl.BlockSpec((tm, K), lambda i, j: (i, 0)),
                pl.BlockSpec((K, tn), lambda i, j: (0, j)),
                pl.BlockSpec((1, tn), lambda i, j: (0, j)),
            ],
            out_specs=pl.BlockSpec((tm, tn), lambda i, j: (i, j)),
        ),
        compiler_params=pltpu.CompilerParams(
            dimension_semantics=("parallel", "parallel"),
            vmem_limit_bytes=vmem_limit,
        ),
        cost_estimate=cost,
    )(x, w, b)

    if M_pad != M or N_pad != N:
        out = out[:M, :N]
    # (B, nH*nW, embed_dim) == torch: proj(x).flatten(2).transpose(1, 2)
    return out.reshape(B, nh * nw, embed_dim)


# TODO(synk): layer_norm=False in the reference defaults (self.norm is never
# defined for the default config), so LayerNorm is intentionally omitted.


if __name__ == "__main__":
    def conv_ref(latent, weight, bias, patch_size):
        embed_dim = weight.shape[0]
        r = jax.lax.conv_general_dilated(
            latent.astype(jnp.float32), weight.astype(jnp.float32),
            window_strides=(patch_size, patch_size), padding="VALID",
            dimension_numbers=("NCHW", "OIHW", "NCHW"),
            precision=jax.lax.Precision.HIGHEST,
        ) + bias.astype(jnp.float32).reshape(1, embed_dim, 1, 1)
        B = latent.shape[0]
        return r.reshape(B, embed_dim, -1).transpose(0, 2, 1)

    # --- case 1: small shapes (B=2, C=4, H=W=16, patch=8, dim=32) ---
    B, C, H, W, p, D = 2, 4, 16, 16, 8, 32
    k_x, k_w, k_b = jax.random.split(jax.random.PRNGKey(0), 3)
    latent = jax.random.normal(k_x, (B, C, H, W), dtype=jnp.float32)
    weight = jax.random.normal(k_w, (D, C, p, p), dtype=jnp.float32) * 0.02
    bias = jax.random.normal(k_b, (D,), dtype=jnp.float32) * 0.02

    ref = conv_ref(latent, weight, bias, p)

    # default bf16 MXU fast path (f32 accumulation) -> looser tolerance
    out = jax.block_until_ready(
        patch_embed_forward(latent, weight, bias, patch_size=p))
    assert out.shape == (B, (H // p) * (W // p), D)
    assert jnp.allclose(out, ref.astype(out.dtype), atol=3e-2, rtol=3e-2)

    # strict f32 operand path (opt-out of the bf16 default)
    out_f32 = jax.block_until_ready(
        patch_embed_forward(latent, weight, bias, patch_size=p,
                            matmul_dtype=jnp.float32))
    assert jnp.allclose(out_f32, ref.astype(out_f32.dtype), atol=1e-4, rtol=1e-4)

    # --- case 2: exercises the tiled-M grid + small-K (unpadded) path ---
    B, C, H, W, p, D = 2, 4, 128, 128, 4, 384
    k_x, k_w, k_b = jax.random.split(jax.random.PRNGKey(1), 3)
    latent = jax.random.normal(k_x, (B, C, H, W), dtype=jnp.float32)
    weight = jax.random.normal(k_w, (D, C, p, p), dtype=jnp.float32) * 0.05
    bias = jax.random.normal(k_b, (D,), dtype=jnp.float32) * 0.05

    ref2 = conv_ref(latent, weight, bias, p)

    out2 = jax.block_until_ready(
        patch_embed_forward(latent, weight, bias, patch_size=p))
    assert out2.shape == (B, (H // p) * (W // p), D)
    assert jnp.allclose(out2, ref2.astype(out2.dtype), atol=3e-2, rtol=3e-2)

    out2_f32 = jax.block_until_ready(
        patch_embed_forward(latent, weight, bias, patch_size=p,
                            matmul_dtype=jnp.float32))
    assert jnp.allclose(out2_f32, ref2.astype(out2_f32.dtype), atol=1e-3, rtol=1e-3)

    print("KERNEL_OK")
</pallas_src>

<mosaic_0001>
module attributes {stable_mosaic.version = 11 : i64} {
  func.func @_patch_proj_kernel(%arg0: i32, %arg1: i32, %arg2: memref<16x256xbf16, #tpu.memory_space<vmem>>, %arg3: memref<256x128xbf16, #tpu.memory_space<vmem>>, %arg4: memref<1x128xf32, #tpu.memory_space<vmem>>, %arg5: memref<16x128xf32, #tpu.memory_space<vmem>>) attributes {dimension_semantics = [#tpu.dimension_semantics<parallel>, #tpu.dimension_semantics<parallel>], iteration_bounds = array<i64: 1, 1>, scalar_prefetch = 0 : i64, scratch_operands = 0 : i64, tpu.core_type = #tpu.core_type<tc>, window_params = [{transform_indices = @transform_0, window_bounds = array<i64: 16, 256>}, {transform_indices = @transform_1, window_bounds = array<i64: 256, 128>}, {transform_indices = @transform_2, window_bounds = array<i64: 1, 128>}, {transform_indices = @transform_3, window_bounds = array<i64: 16, 128>}]} {
    %c0 = arith.constant 0 : index
    %c0_0 = arith.constant 0 : index
    %0 = vector.load %arg2[%c0, %c0_0] : memref<16x256xbf16, #tpu.memory_space<vmem>>, vector<16x256xbf16>
    %c0_1 = arith.constant 0 : index
    %c0_2 = arith.constant 0 : index
    %1 = vector.load %arg3[%c0_1, %c0_2] : memref<256x128xbf16, #tpu.memory_space<vmem>>, vector<256x128xbf16>
    %cst = arith.constant dense<0.000000e+00> : vector<16x128xf32>
    %2 = tpu.matmul %0, %1, %cst {dimension_numbers = #tpu.dot_dimension_numbers<[1], [0], [0], [1], [0, 0, 1, 1], [], []>} : vector<16x256xbf16>, vector<256x128xbf16>, vector<16x128xf32> -> vector<16x128xf32>
    %c0_3 = arith.constant 0 : index
    %c0_4 = arith.constant 0 : index
    %3 = vector.load %arg4[%c0_3, %c0_4] : memref<1x128xf32, #tpu.memory_space<vmem>>, vector<1x128xf32>
    %4 = vector.broadcast %3 : vector<1x128xf32> to vector<16x128xf32>
    %5 = arith.addf %2, %4 : vector<16x128xf32>
    %c0_5 = arith.constant 0 : index
    %c0_6 = arith.constant 0 : index
    %6 = vector.load %arg5[%c0_5, %c0_6] : memref<16x128xf32, #tpu.memory_space<vmem>>, vector<16x128xf32>
    tpu.vector_store %arg5[%c0_5, %c0_6], %5 {strides = array<i32>} : memref<16x128xf32, #tpu.memory_space<vmem>>, vector<16x128xf32>,
    return
  }
  func.func @transform_0(%arg0: i32, %arg1: i32) -> (i32, i32) {
    %c0_i32 = arith.constant 0 : i32
    %c0_i32_0 = arith.constant 0 : i32
    return %arg0, %c0_i32 : i32, i32
  }
  func.func @transform_1(%arg0: i32, %arg1: i32) -> (i32, i32) {
    %c0_i32 = arith.constant 0 : i32
    %c0_i32_0 = arith.constant 0 : i32
    return %c0_i32, %arg1 : i32, i32
  }
  func.func @transform_2(%arg0: i32, %arg1: i32) -> (i32, i32) {
    %c0_i32 = arith.constant 0 : i32
    %c0_i32_0 = arith.constant 0 : i32
    return %c0_i32, %arg1 : i32, i32
  }
  func.func @transform_3(%arg0: i32, %arg1: i32) -> (i32, i32) {
    %c0_i32 = arith.constant 0 : i32
    return %arg0, %arg1 : i32, i32
  }
}

</mosaic_0001>

<bundles_post_ra>
// kernel: patch_embed_forward.1
= control target key start
LH: loop header
LB: loop body
LE: loop exit
PB: predicated region body
PF: predicated region fallthrough
CT: control target
= control target key end

     0   :  { %s352_s1 = inlined_call_operand.vmem [shape: bf16[256,128], index: 1, kind: input, shape index: {}]   ;;  %s353_s0 = inlined_call_operand.vmem [shape: bf16[16,256], index: 0, kind: input, shape index: {}]   ;;  %s354_s2 = inlined_call_operand.vmem [shape: f32[1,128], index: 2, kind: input, shape index: {}]   ;;  %s355_s3 = inlined_call_operand.vmem [shape: f32[16,128], index: 3, kind: output, shape index: {}]  }
   0x1   :  { %v250_v0 = vld [vmem:[%s352_s1 + $0x40] sm:$0xff]   ;;  %v252_v2 = vld [vmem:[%s352_s1 + $0x48] sm:$0xff]   ;;  %v254_v4 = vld [vmem:[%s352_s1 + $0x50] sm:$0xff]  }
   0x2   :  { %v251_v1 = vld [vmem:[%s352_s1] sm:$0xff]   ;;  %228 = vmatprep.subr.bf16.mxu0 %v250_v0  ;;  %v253_v3 = vld [vmem:[%s352_s1 + $0x8] sm:$0xff]   ;;  %v255_v5 = vld [vmem:[%s352_s1 + $0x10] sm:$0xff]  }
   0x3   :  { %229 = vmatpush3.bf16.msra.mxu0 %v251_v1  ;;  %v256_v6 = vld [vmem:[%s352_s1 + $0x58] sm:$0xff]   ;;  %v258_v8 = vld [vmem:[%s352_s1 + $0x60] sm:$0xff]   ;;  %v260_v10 = vld [vmem:[%s352_s1 + $0x68] sm:$0xff]  }
   0x4   :  { %230 = vmatprep.subr.bf16.mxu0 %v252_v2  ;;  %v257_v7 = vld [vmem:[%s352_s1 + $0x18] sm:$0xff]   ;;  %v259_v9 = vld [vmem:[%s352_s1 + $0x20] sm:$0xff]   ;;  %v261_v12 = vld [vmem:[%s352_s1 + $0x28] sm:$0xff]  }
   0x5   :  { %v268_v11 = vld [vmem:[%s353_s0 + $0x4] ss:$8 sps:$4 sm:$0xff]   ;;  %v262_v13 = vld [vmem:[%s352_s1 + $0x70] sm:$0xff]   ;;  %v264_v15 = vld [vmem:[%s352_s1 + $0x78] sm:$0xff]  }
   0x6   :  { %194 = vmatprep.mubr.bf16.mxu0 %v268_v11  ;;  %v263_v14 = vld [vmem:[%s352_s1 + $0x30] sm:$0xff]   ;;  %v265_v16 = vld [vmem:[%s352_s1 + $0x38] sm:$0xff]   ;;  %v266_v17 = vld [vmem:[%s353_s0] ss:$8 sps:$4 sm:$0xff]  }
   0x7   :  { %231 = vmatpush3.bf16.msra.mxu0 %v253_v3  ;;  %v209_v19 = vld [vmem:[%s354_s2] ss:$0 sm:$0xff] }
   0x8   :  { %232 = vmatprep.subr.bf16.mxu0 %v254_v4 }
   0xb   :  { %233 = vmatpush3.bf16.msra.mxu0 %v255_v5 }
   0xc   :  { %234 = vmatprep.subr.bf16.mxu0 %v256_v6 }
   0xf   :  { %235 = vmatpush3.bf16.msra.mxu0 %v257_v7 }
  0x10   :  { %236 = vmatprep.subr.bf16.mxu0 %v258_v8 }
  0x13   :  { %237 = vmatpush3.bf16.msra.mxu0 %v259_v9 }
  0x14   :  { %238 = vmatprep.subr.bf16.mxu0 %v260_v10 }
  0x17   :  { %239 = vmatpush3.bf16.msra.mxu0 %v261_v12 }
  0x18   :  { %240 = vmatprep.subr.bf16.mxu0 %v262_v13 }
  0x1b   :  { %241 = vmatpush3.bf16.msra.mxu0 %v263_v14 }
  0x1c   :  { %242 = vmatprep.subr.bf16.mxu0 %v264_v15 }
  0x1f   :  { %243 = vmatpush3.bf16.msra.mxu0 %v265_v16 }
  0x22   :  { %195 = vmatmul.mubr.bf16.vlgmr.msra.gmra.mrb[0].mxu0 %v266_v17 }
  0xf5   :  { %v244_v18 = vpop.f32.mrb[0].mxu0 }
  0xf6   :  { %v245_v20 = vpop.f32.mrb[1].mxu0 }
  0xf7   :  { %v246_v21 = vadd.f32 %v245_v20, %v244_v18  ;;  %v247_v22 = vpop.f32.mrb[2].mxu0 }
  0xf8   :  { %v248_v23 = vpop.f32.mrb[3].mxu0 }
  0xf9   :  { %v197_v24 = vadd.f32 %v246_v21, %v209_v19  ;;  %v249_v25 = vadd.f32 %v248_v23, %v247_v22 }
  0xfb   :  { %203 = vst [vmem:[%s355_s3] sm:$0xff] %v197_v24  ;;  %v200_v26 = vadd.f32 %v249_v25, %v209_v19 }
  0xfd   :  { %204 = vst [vmem:[%s355_s3 + $0x8] sm:$0xff] %v200_v26 }

</bundles_post_ra>
